<compile_context>
chip_gen: v5e
topology: v5e:2x2
jax: 0.10.0
libtpu: 0.0.40
codegen_flags: <defaults>
</compile_context>

<pallas_src>
import functools

import jax
import jax.numpy as jnp
from jax import lax
from jax.experimental import pallas as pl
from jax.experimental.pallas import tpu as pltpu


# ---------------------------------------------------------------------------
# Kernel 1: fused q/k/v projection (one wide MXU matmul, three lane-dense writes)
# ---------------------------------------------------------------------------
def _qkv_proj_kernel(x_ref, w_ref, q_ref, k_ref, v_ref, *, head_size):
    x = x_ref[0]                    # (tm, C)  native dtype (bf16 fast path)
    w = w_ref[...]                  # (C, 3H)
    qkv = jnp.dot(x, w, preferred_element_type=jnp.float32)   # (tm, 3H) f32 acc
    h = head_size
    q_ref[0] = qkv[:, 0 * h:1 * h].astype(q_ref.dtype)
    k_ref[0] = qkv[:, 1 * h:2 * h].astype(k_ref.dtype)
    v_ref[0] = qkv[:, 2 * h:3 * h].astype(v_ref.dtype)


def _qkv_projection(x, w_qkv, head_size, *, tile_m, vmem_limit):
    B, T, C = x.shape
    H = head_size
    kern = functools.partial(_qkv_proj_kernel, head_size=H)
    qkv_struct = jax.ShapeDtypeStruct((B, T, H), x.dtype)
    return pl.pallas_call(
        kern,
        out_shape=(qkv_struct, qkv_struct, qkv_struct),
        grid_spec=pltpu.PrefetchScalarGridSpec(
            num_scalar_prefetch=0,
            grid=(B, T // tile_m),
            in_specs=[
                pl.BlockSpec((1, tile_m, C), lambda b, i: (b, i, 0)),
                pl.BlockSpec((C, 3 * H), lambda b, i: (0, 0)),
            ],
            out_specs=[
                pl.BlockSpec((1, tile_m, H), lambda b, i: (b, i, 0)),
                pl.BlockSpec((1, tile_m, H), lambda b, i: (b, i, 0)),
                pl.BlockSpec((1, tile_m, H), lambda b, i: (b, i, 0)),
            ],
        ),
        compiler_params=pltpu.CompilerParams(
            dimension_semantics=("parallel", "parallel"),
            vmem_limit_bytes=vmem_limit),
    )(x, w_qkv)


# ---------------------------------------------------------------------------
# Kernel 2: causal flash attention with online softmax
# ---------------------------------------------------------------------------
def _flash_attn_kernel(q_ref, k_ref, v_ref, o_ref, m_sc, l_sc, acc_sc, *, scale):
    qi = pl.program_id(1)
    kv = pl.program_id(2)

    @pl.when(kv == 0)
    def _init():
        m_sc[...] = jnp.full(m_sc.shape, -jnp.inf, dtype=m_sc.dtype)
        l_sc[...] = jnp.zeros_like(l_sc)
        acc_sc[...] = jnp.zeros_like(acc_sc)

    def _accumulate(apply_mask):
        q = q_ref[0]                # (tq, H)  native dtype
        k = k_ref[0]                # (tk, H)
        v = v_ref[0]                # (tk, H)
        # Contract the head axis of q and k directly; no k.T materialization.
        s = lax.dot_general(
            q, k, dimension_numbers=(((1,), (1,)), ((), ())),
            preferred_element_type=jnp.float32) * scale        # (tq, tk) f32
        if apply_mask:
            # Diagonal block: tile_q == tile_kv and qi == kv, so the local
            # row/col indices give the causal (tril) condition directly.
            row = lax.broadcasted_iota(jnp.int32, s.shape, 0)
            col = lax.broadcasted_iota(jnp.int32, s.shape, 1)
            s = jnp.where(col <= row, s, -jnp.inf)
        m_prev = m_sc[...]
        m_new = jnp.maximum(m_prev, jnp.max(s, axis=-1, keepdims=True))
        alpha = jnp.exp(m_prev - m_new)
        p = jnp.exp(s - m_new)
        l_sc[...] = alpha * l_sc[...] + jnp.sum(p, axis=-1, keepdims=True)
        acc_sc[...] = alpha * acc_sc[...] + jnp.dot(
            p.astype(v.dtype), v, preferred_element_type=jnp.float32)
        m_sc[...] = m_new

    # Fully-visible (below-diagonal) KV blocks: no mask arithmetic at all.
    @pl.when(kv < qi)
    def _full_block():
        _accumulate(apply_mask=False)

    # Diagonal block: apply the causal mask, then finalize/write the output.
    # KV blocks strictly above the diagonal (kv > qi) are skipped entirely
    # (~2x fewer QK^T / PV FLOPs for causal attention).
    @pl.when(kv == qi)
    def _diag_block():
        _accumulate(apply_mask=True)
        o_ref[0] = (acc_sc[...] *
                    pl.reciprocal(l_sc[...], approx=True)).astype(o_ref.dtype)


def _flash_attention(q, k, v, *, tile, vmem_limit):
    B, T, H = q.shape
    scale = float(H) ** -0.5
    n_blk = T // tile
    kern = functools.partial(_flash_attn_kernel, scale=scale)
    return pl.pallas_call(
        kern,
        out_shape=jax.ShapeDtypeStruct((B, T, H), q.dtype),
        grid_spec=pltpu.PrefetchScalarGridSpec(
            num_scalar_prefetch=0,
            grid=(B, n_blk, n_blk),
            in_specs=[
                pl.BlockSpec((1, tile, H), lambda b, i, j: (b, i, 0)),
                pl.BlockSpec((1, tile, H), lambda b, i, j: (b, j, 0)),
                pl.BlockSpec((1, tile, H), lambda b, i, j: (b, j, 0)),
            ],
            out_specs=pl.BlockSpec((1, tile, H), lambda b, i, j: (b, i, 0)),
            scratch_shapes=[
                pltpu.VMEM((tile, 1), jnp.float32),   # running max  m
                pltpu.VMEM((tile, 1), jnp.float32),   # running sum  l
                pltpu.VMEM((tile, H), jnp.float32),   # unnormalized accumulator
            ],
        ),
        compiler_params=pltpu.CompilerParams(
            dimension_semantics=("parallel", "parallel", "arbitrary"),
            vmem_limit_bytes=vmem_limit),
    )(q, k, v)


# ---------------------------------------------------------------------------
# Public wrapper: forward pass of the Head module (eval mode)
# ---------------------------------------------------------------------------
def head_forward(x, wk, wq, wv, *, tile=128):
    """x: (B, T, C); wk/wq/wv: (C, H) (transposed nn.Linear weights) -> (B, T, H)."""
    B, T, C = x.shape
    H = wk.shape[1]
    if T % tile != 0:
        tile = T   # short sequences: one tile (block == full sequence dim)
    # TODO(synk): general T (not divisible by the tile) needs padding + masking.

    # Fuse the three projections into a single (C, 3H) weight.
    w_qkv = jnp.concatenate([wq, wk, wv], axis=1).astype(x.dtype)

    # Explicit scoped-VMEM budget with headroom; fits v5e/v6e (128 MiB) and
    # v7x (64 MiB) physical VMEM for these tile sizes.
    vmem_limit = 32 * 1024 * 1024

    q, k, v = _qkv_projection(x, w_qkv, H, tile_m=tile, vmem_limit=vmem_limit)
    return _flash_attention(q, k, v, tile=tile, vmem_limit=vmem_limit)


def head_reference(x, wk, wq, wv):
    """Pure-JAX reference mirroring the PyTorch forward (eval mode), f32 math."""
    k = x @ wk
    q = x @ wq
    v = x @ wv
    wei = (q @ jnp.swapaxes(k, -2, -1)) * (wk.shape[1] ** -0.5)
    T = x.shape[1]
    tril = jnp.tril(jnp.ones((T, T), dtype=bool))
    wei = jnp.where(tril, wei, -jnp.inf)
    wei = jax.nn.softmax(wei, axis=-1)
    return wei @ v


if __name__ == "__main__":
    # Shapes consistent with the module: n_embd = 256, block_size = 256,
    # head_size = 128 (e.g. n_head = 2).  batch = 2.
    B, T, C, H = 2, 256, 256, 128
    key = jax.random.PRNGKey(0)
    kx, kk, kq, kv = jax.random.split(key, 4)

    # bf16 operands -> native MXU fast path; kernels accumulate in f32.
    x = jax.random.normal(kx, (B, T, C), dtype=jnp.float32).astype(jnp.bfloat16)
    wk = (jax.random.normal(kk, (C, H), dtype=jnp.float32) * C ** -0.5).astype(jnp.bfloat16)
    wq = (jax.random.normal(kq, (C, H), dtype=jnp.float32) * C ** -0.5).astype(jnp.bfloat16)
    wv = (jax.random.normal(kv, (C, H), dtype=jnp.float32) * C ** -0.5).astype(jnp.bfloat16)

    out = head_forward(x, wk, wq, wv)
    out = jax.block_until_ready(out)

    ref = head_reference(x.astype(jnp.float32), wk.astype(jnp.float32),
                         wq.astype(jnp.float32), wv.astype(jnp.float32))
    assert out.shape == (B, T, H)
    out_f32 = out.astype(jnp.float32)
    max_err = jnp.max(jnp.abs(out_f32 - ref))
    # Loose tolerance: bf16 operands + bf16 q/k/v intermediates + approx
    # reciprocal vs an all-f32 reference.
    assert jnp.allclose(out_f32, ref, atol=5e-2, rtol=5e-2), (
        f"mismatch vs reference, max abs err = {max_err}")

    print("KERNEL_OK")
</pallas_src>

<mosaic_0001>
module attributes {stable_mosaic.version = 11 : i64} {
  func.func @_qkv_proj_kernel(%arg0: i32, %arg1: i32, %arg2: memref<1x128x256xbf16, #tpu.memory_space<vmem>>, %arg3: memref<256x384xbf16, #tpu.memory_space<vmem>>, %arg4: memref<1x128x128xbf16, #tpu.memory_space<vmem>>, %arg5: memref<1x128x128xbf16, #tpu.memory_space<vmem>>, %arg6: memref<1x128x128xbf16, #tpu.memory_space<vmem>>) attributes {dimension_semantics = [#tpu.dimension_semantics<parallel>, #tpu.dimension_semantics<parallel>], iteration_bounds = array<i64: 2, 2>, scalar_prefetch = 0 : i64, scratch_operands = 0 : i64, tpu.core_type = #tpu.core_type<tc>, window_params = [{transform_indices = @transform_0, window_bounds = array<i64: 1, 128, 256>}, {pipeline_mode = #tpu.pipeline_mode<synchronous>, transform_indices = @transform_1, window_bounds = array<i64: 256, 384>}, {transform_indices = @transform_2, window_bounds = array<i64: 1, 128, 128>}, {transform_indices = @transform_3, window_bounds = array<i64: 1, 128, 128>}, {transform_indices = @transform_4, window_bounds = array<i64: 1, 128, 128>}]} {
    %c0 = arith.constant 0 : index
    %c0_0 = arith.constant 0 : index
    %c0_1 = arith.constant 0 : index
    %0 = vector.load %arg2[%c0, %c0_0, %c0_1] : memref<1x128x256xbf16, #tpu.memory_space<vmem>>, vector<1x128x256xbf16>
    %1 = vector.shape_cast %0 : vector<1x128x256xbf16> to vector<128x256xbf16>
    %c0_2 = arith.constant 0 : index
    %c0_3 = arith.constant 0 : index
    %2 = vector.load %arg3[%c0_2, %c0_3] : memref<256x384xbf16, #tpu.memory_space<vmem>>, vector<256x384xbf16>
    %cst = arith.constant dense<0.000000e+00> : vector<128x384xf32>
    %3 = tpu.matmul %1, %2, %cst {dimension_numbers = #tpu.dot_dimension_numbers<[1], [0], [0], [1], [0, 0, 1, 1], [], []>} : vector<128x256xbf16>, vector<256x384xbf16>, vector<128x384xf32> -> vector<128x384xf32>
    %4 = vector.extract_strided_slice %3 {offsets = [0, 0], sizes = [128, 128], strides = [1, 1]} : vector<128x384xf32> to vector<128x128xf32>
    %5 = arith.truncf %4 : vector<128x128xf32> to vector<128x128xbf16>
    %c0_4 = arith.constant 0 : index
    %c0_5 = arith.constant 0 : index
    %c0_6 = arith.constant 0 : index
    %6 = vector.load %arg4[%c0_4, %c0_5, %c0_6] : memref<1x128x128xbf16, #tpu.memory_space<vmem>>, vector<1x128x128xbf16>
    %7 = vector.shape_cast %6 : vector<1x128x128xbf16> to vector<128x128xbf16>
    %8 = vector.shape_cast %5 : vector<128x128xbf16> to vector<1x128x128xbf16>
    tpu.vector_store %arg4[%c0_4, %c0_5, %c0_6], %8 {strides = array<i32>} : memref<1x128x128xbf16, #tpu.memory_space<vmem>>, vector<1x128x128xbf16>,
    %9 = vector.extract_strided_slice %3 {offsets = [0, 128], sizes = [128, 128], strides = [1, 1]} : vector<128x384xf32> to vector<128x128xf32>
    %10 = arith.truncf %9 : vector<128x128xf32> to vector<128x128xbf16>
    %c0_7 = arith.constant 0 : index
    %c0_8 = arith.constant 0 : index
    %c0_9 = arith.constant 0 : index
    %11 = vector.load %arg5[%c0_7, %c0_8, %c0_9] : memref<1x128x128xbf16, #tpu.memory_space<vmem>>, vector<1x128x128xbf16>
    %12 = vector.shape_cast %11 : vector<1x128x128xbf16> to vector<128x128xbf16>
    %13 = vector.shape_cast %10 : vector<128x128xbf16> to vector<1x128x128xbf16>
    tpu.vector_store %arg5[%c0_7, %c0_8, %c0_9], %13 {strides = array<i32>} : memref<1x128x128xbf16, #tpu.memory_space<vmem>>, vector<1x128x128xbf16>,
    %14 = vector.extract_strided_slice %3 {offsets = [0, 256], sizes = [128, 128], strides = [1, 1]} : vector<128x384xf32> to vector<128x128xf32>
    %15 = arith.truncf %14 : vector<128x128xf32> to vector<128x128xbf16>
    %c0_10 = arith.constant 0 : index
    %c0_11 = arith.constant 0 : index
    %c0_12 = arith.constant 0 : index
    %16 = vector.load %arg6[%c0_10, %c0_11, %c0_12] : memref<1x128x128xbf16, #tpu.memory_space<vmem>>, vector<1x128x128xbf16>
    %17 = vector.shape_cast %16 : vector<1x128x128xbf16> to vector<128x128xbf16>
    %18 = vector.shape_cast %15 : vector<128x128xbf16> to vector<1x128x128xbf16>
    tpu.vector_store %arg6[%c0_10, %c0_11, %c0_12], %18 {strides = array<i32>} : memref<1x128x128xbf16, #tpu.memory_space<vmem>>, vector<1x128x128xbf16>,
    return
  }
  func.func @transform_0(%arg0: i32, %arg1: i32) -> (i32, i32, i32) {
    %c0_i32 = arith.constant 0 : i32
    %c0_i32_0 = arith.constant 0 : i32
    return %arg0, %arg1, %c0_i32 : i32, i32, i32
  }
  func.func @transform_1(%arg0: i32, %arg1: i32) -> (i32, i32) {
    %c0_i32 = arith.constant 0 : i32
    %c0_i32_0 = arith.constant 0 : i32
    %c0_i32_1 = arith.constant 0 : i32
    return %c0_i32, %c0_i32_0 : i32, i32
  }
  func.func @transform_2(%arg0: i32, %arg1: i32) -> (i32, i32, i32) {
    %c0_i32 = arith.constant 0 : i32
    %c0_i32_0 = arith.constant 0 : i32
    return %arg0, %arg1, %c0_i32 : i32, i32, i32
  }
  func.func @transform_3(%arg0: i32, %arg1: i32) -> (i32, i32, i32) {
    %c0_i32 = arith.constant 0 : i32
    %c0_i32_0 = arith.constant 0 : i32
    return %arg0, %arg1, %c0_i32 : i32, i32, i32
  }
  func.func @transform_4(%arg0: i32, %arg1: i32) -> (i32, i32, i32) {
    %c0_i32 = arith.constant 0 : i32
    %c0_i32_0 = arith.constant 0 : i32
    return %arg0, %arg1, %c0_i32 : i32, i32, i32
  }
}

</mosaic_0001>

<bundles_post_ra>
// kernel: tpu_custom_call.1
= control target key start
LH: loop header
LB: loop body
LE: loop exit
PB: predicated region body
PF: predicated region fallthrough
CT: control target
= control target key end

     0   :  { %s2557_s0 = inlined_call_operand.hbm [shape: bf16[2,256,256], index: 0, kind: input, shape index: {}]   ;;  %s2558_s1 = inlined_call_operand.hbm [shape: bf16[256,384], index: 1, kind: input, shape index: {}]   ;;  %s2559_s2 = inlined_call_operand.hbm [shape: bf16[2,256,128], index: 2, kind: output, shape index: {0}]   ;;  %s2560_s3 = inlined_call_operand.hbm [shape: bf16[2,256,128], index: 3, kind: output, shape index: {1}]   ;;  %s2561_s4 = inlined_call_operand.hbm [shape: bf16[2,256,128], index: 4, kind: output, shape index: {2}]  }
   0x1   :  { %2569 = sst [smem:[#allocation19_spill]] %s2558_s1 }
   0x2   :  { %2570 = sst [smem:[#allocation20_spill]] %s2560_s3 }
   0x3   :  { %2571 = sst [smem:[#allocation21_spill]] %s2561_s4 }
   0x4   :  { %10 = vsyncpa [#allocation3], 0 }
   0x5   :  { %12 = vsyncpa [#allocation3 + $0x1], 0 }
   0x6   :  { %13 = vsyncpa [#allocation6], 0 }
   0x7   :  { %14 = vsyncpa [#allocation4], 0 }
   0x8   :  { %16 = vsyncpa [#allocation4 + $0x1], 0 }
   0x9   :  { %17 = vsyncpa [#allocation9], 0 }
   0xa   :  { %19 = vsyncpa [#allocation9 + $0x1], 0  ;;  %s2190_s15 = smov 0   ;;  %s2192_s16 = smov 0  }
   0xb   :  { %s2194_s17 = smov 0   ;;  %s2196_s18 = smov 0  }
   0xc   :  { %s2198_s19 = smov 0   ;;  %s2200_s20 = smov 0  }
   0xd   :  { %s2202_s21 = smov 0   ;;  %s2204_s22 = smov 0  }
   0xe LB: > { %2572 = sst [smem:[#allocation15_spill]] %s2128_s15  ;;  %s2231_s23 = sadd.s32 4294967295, %s2156_s22   ;;  %s2156_s22 = sphi %s2204_s22, %s25_s22   ;;  %s2152_s21 = sphi %s2202_s21, %s2594_s21   ;;  %s2148_s20 = sphi %s2200_s20, %s2589_s20   ;;  %s2144_s19 = sphi %s2198_s19, %s2593_s19   ;;  %s2140_s18 = sphi %s2196_s18, %s2588_s18   ;;  %s2136_s17 = sphi %s2194_s17, %s2592_s17   ;;  %s2132_s16 = sphi %s2192_s16, %s2591_s16   ;;  %s2128_s15 = sphi %s2190_s15, %s2590_s15  }
   0xf   : > { %2573 = sst [smem:[#allocation16_spill]] %s2148_s20  ;;  %s2562_s24 = sadd.s32 4294967294, %s2156_s22  }
  0x10   : > { %p59_p0 = scmp.ne.s32.totalorder %s2132_s16, %s2128_s15  ;;  %p60_p1 = scmp.eq.s32.totalorder %s2231_s23, 0 }
  0x11   : > { %p106_p2 = scmp.eq.s32.totalorder %s2231_s23, 3  ;;  %p112_p3 = scmp.eq.s32.totalorder %s2562_s24, 3 }
  0x12   : > { %p2242_p4 = por %p60_p1, %p59_p0  ;;  %p1323_p5 = scmp.ge.s32.totalorder %s2156_s22, 1 }
  0x13   : > { %p2247_p6 = por %p112_p3, %p59_p0  ;;  %p175_p7 = scmp.lt.s32.totalorder %s2156_s22, 5 }
  0x14   : > { %s2577_s1 = sld [smem:[#allocation19_spill]]  ;;  %s2158_s5 = smov [#allocation5]  }
  0x15   : > { %s2575_s26 = scalar_select %p2247_p6, 1, 0 }
  0x16   : > { %p2255_p8 = pnand %p1323_p5, %p175_p7  ;;  %s188_s6 = sshll.u32 %s2158_s5, 4  ;;  %s189_s6 = int_to_ptr.vmem [resolvable:$true] %s188_s6 }
  0x17   : > { %2576 = sst [smem:[#allocation17_spill]] %s2575_s26  ;;  %s2159_s7 = smov 192  }
  0x18   : > { %p1841_p9 = pneg %p2255_p8  ;;  %s2160_s8 = smov 12  }
  0x19   : > { %s34_s9 = sadd.s32 1, %s2148_s20  ;;  %s37_s10 = sadd.s32 1, %s2152_s21 }
  0x1a   : > { %s186_s29 = sshll.u32 %s2577_s1, 4  ;;  %p1842_p10 = pnand %p1841_p9, %p60_p1  ;;  %s187_s29 = int_to_ptr.hbm [resolvable:$true] %s186_s29 }
  0x1b   : > { %p35_p11 = scmp.ge.s32.totalorder %s34_s9, 2  ;;  %s46_s11 = sadd.s32 1, %s2136_s17 }
  0x1c   : > { %1844 = dma.hbm_to_vmem [thread:$0]  (!%p1842_p10), %s187_s29, 6144, %s189_s6, [#allocation6], %s2159_s7, %s2159_s7, %s2160_s8  }
  0x1d   : > { %p53_p12 = scmp.ne.s32.totalorder %s2136_s17, %s2132_s16  ;;  %s2596_s9 = smov (%p35_p11, %s34_s9), 0 }
  0x1e   : > { %2579 = sst [smem:[#allocation18_spill]] %s2596_s9  ;;  %s2598_s10 = smov (!%p35_p11, %s37_s10), %s2152_s21 }
  0x1f   : > { %s42_s12 = ssub.s32 %s2148_s20, %s2596_s9  ;;  %p54_p13 = scmp.eq.s32.totalorder %s2156_s22, 0 }
  0x20   : > { %p39_p0 = scmp.ge.s32.totalorder %s2598_s10, 2  ;;  %p2276_p3 = por %p106_p2, %p53_p12 }
  0x21   : > { %p2280_p5 = por %p54_p13, %p53_p12  ;;  %p1860_p7 = scmp.lt.s32.totalorder %s2156_s22, 4 }
  0x22   : > { %s2600_s10 = smov (%p39_p0, %s2598_s10), 0  ;;  %s202_s27 = sand.u32 1, %s2136_s17  }
  0x23   : > { %s1607_s28 = sshll.u32 %s2148_s20, 5  ;;  %s41_s29 = ssub.s32 %s2152_s21, %s2600_s10 }
  0x24   : > { %s43_s5 = sor.u32 %s42_s12, %s41_s29  ;;  %s1326_s6 = sshll.u32 %s202_s27, 7 }
  0x25   : > { %p44_p9 = scmp.eq.s32.totalorder %s43_s5, 0  ;;  %s1329_s7 = sshll.u32 %s2152_s21, 6 }
  0x26   : > { %s206_s8 = scalar_lea.vmem [#allocation2], %s1326_s6  ;;  %s212_s9 = sadd.s32 %s1607_s28, %s1329_s7 }
  0x27   : > { %s217_s24 = sshll.u32 %s206_s8, 4  ;;  %s1330_s26 = sshll.u32 %s212_s9, 2  ;;  %s218_s24 = int_to_ptr.vmem [resolvable:$true] %s217_s24 }
  0x28   : > { %s2293_s1 = scalar_select %p44_p9, %s2136_s17, %s46_s11  }
  0x29   : > { %p1846_p2 = pnand %p1860_p7, %p2280_p5  ;;  %s214_s3 = scalar_lea.hbm %s2557_s0, %s1330_s26 }
  0x2a   : > { %s215_s20 = sshll.u32 %s214_s3, 4  ;;  %s203_s12 = scalar_lea.sflag [#allocation3], %s202_s27  ;;  %s216_s20 = int_to_ptr.hbm [resolvable:$true] %s215_s20 }
  0x2b   : > { %s2161_s29 = smov 128   ;;  %s2162_s5 = smov 8  }
  0x2c   : > { %1848 = dma.hbm_to_vmem [thread:$0]  (!%p1846_p2), %s216_s20, 2048, %s218_s24, %s203_s12, %s2161_s29, %s2161_s29, %s2162_s5  }
  0x2d   : > { %229 = sbr.rel (%p2255_p8) target bundleno = 425 (0x1a9), region = 28  ;;  %s2305_s11 = sand.u32 (!%p2255_p8), 1, %s2132_s16  }
  0x2e   : > { %s1332_s9 = sshll.u32 (!%p2255_p8), %s2305_s11, 7  ;;  %s232_s14 = scalar_lea.sflag (!%p2255_p8), [#allocation3], %s2305_s11 }
  0x2f   : > { %s2309_s28 = scalar_lea.vmem (!%p2255_p8), [#allocation2], %s1332_s9 }
  0x32   : > { %2111 = dma.done.wait (%p2242_p4), %s232_s14, 2048  }
  0x33   : > { %2113 = vsyncadd (%p2242_p4), %s232_s14, 4294965248 }
  0x34   : > { %2115 = dma.done.wait (%p60_p1), [#allocation6], 6144  }
  0x35   : > { %2117 = vsyncadd (%p60_p1), [#allocation6], 4294961152  ;;  %v1487_v0 = vld [vmem:[#allocation5 + $0xa8] sm:$0xf]  ;;  %v1646_v1 = vld [vmem:[#allocation5 + $0xb0] sm:$0xf0] }
  0x36   : > { %v1583_v2 = vld [vmem:[#allocation5 + $0x168] sm:$0xf]  ;;  %v1488_v3 = vor.u32 %v1646_v1, %v1487_v0  ;;  %v1670_v4 = vld [vmem:[#allocation5 + $0x170] sm:$0xf0]  ;;  %v1475_v5 = vld [vmem:[#allocation5 + $0x90] sm:$0xf] }
  0x37   : > { %v1643_v6 = vld [vmem:[#allocation5 + $0x98] sm:$0xf0]  ;;  %v1584_v7 = vor.u32 %v1670_v4, %v1583_v2  ;;  %v1571_v8 = vld [vmem:[#allocation5 + $0x150] sm:$0xf]  ;;  %v1463_v12 = vld [vmem:[#allocation5 + $0x78] sm:$0xf] }
  0x38   : > { %v1667_v9 = vld [vmem:[#allocation5 + $0x158] sm:$0xf0]  ;;  %696 = vmatpush.bf16.msra.mxu0 %v1488_v3  ;;  %1813 = vmatpush.bf16.msra.mxu2 %v1488_v3  ;;  %v1476_v10 = vor.u32 %v1643_v6, %v1475_v5  ;;  %v1640_v13 = vld [vmem:[#allocation5 + $0x80] sm:$0xf0]  ;;  %v1559_v14 = vld [vmem:[#allocation5 + $0x138] sm:$0xf] }
  0x39   : > { %745 = vmatpush.bf16.msra.mxu1 %v1584_v7  ;;  %1821 = vmatpush.bf16.msra.mxu3 %v1584_v7  ;;  %v1572_v11 = vor.u32 %v1667_v9, %v1571_v8  ;;  %v1664_v15 = vld [vmem:[#allocation5 + $0x140] sm:$0xf0]  ;;  %v1464_v16 = vor.u32 %v1640_v13, %v1463_v12  ;;  %v1451_v18 = vld [vmem:[#allocation5 + $0x60] sm:$0xf]  ;;  %v1637_v19 = vld [vmem:[#allocation5 + $0x68] sm:$0xf0] }
  0x3a   : > { %v1560_v17 = vor.u32 %v1664_v15, %v1559_v14  ;;  %v1547_v20 = vld [vmem:[#allocation5 + $0x120] sm:$0xf]  ;;  %v1661_v21 = vld [vmem:[#allocation5 + $0x128] sm:$0xf0]  ;;  %v1452_v22 = vor.u32 %v1637_v19, %v1451_v18  ;;  %v1439_v24 = vld [vmem:[#allocation5 + $0x48] sm:$0xf] }
  0x3b   : > { %v1548_v23 = vor.u32 %v1661_v21, %v1547_v20  ;;  %v1634_v25 = vld [vmem:[#allocation5 + $0x50] sm:$0xf0]  ;;  %v1535_v26 = vld [vmem:[#allocation5 + $0x108] sm:$0xf]  ;;  %v1427_v30 = vld [vmem:[#allocation5 + $0x30] sm:$0xf] }
  0x3c   : > { %697 = vmatpush.bf16.msra.mxu0 %v1476_v10  ;;  %1814 = vmatpush.bf16.msra.mxu2 %v1476_v10  ;;  %v1658_v27 = vld [vmem:[#allocation5 + $0x110] sm:$0xf0]  ;;  %v1440_v28 = vor.u32 %v1634_v25, %v1439_v24  ;;  %v1631_v31 = vld [vmem:[#allocation5 + $0x38] sm:$0xf0]  ;;  %v1523_v32 = vld [vmem:[#allocation5 + $0xf0] sm:$0xf] }
  0x3d   : > { %746 = vmatpush.bf16.msra.mxu1 %v1572_v11  ;;  %1822 = vmatpush.bf16.msra.mxu3 %v1572_v11  ;;  %v1536_v29 = vor.u32 %v1658_v27, %v1535_v26  ;;  %v1655_v33 = vld [vmem:[#allocation5 + $0xf8] sm:$0xf0]  ;;  %v1428_v34 = vor.u32 %v1631_v31, %v1427_v30  ;;  %v1415_v36 = vld [vmem:[#allocation5 + $0x18] sm:$0xf]  ;;  %v1628_v37 = vld [vmem:[#allocation5 + $0x20] sm:$0xf0] }
  0x3e   : > { %v1524_v35 = vor.u32 %v1655_v33, %v1523_v32  ;;  %v1511_v38 = vld [vmem:[#allocation5 + $0xd8] sm:$0xf]  ;;  %v1652_v39 = vld [vmem:[#allocation5 + $0xe0] sm:$0xf0]  ;;  %v1416_v40 = vor.u32 %v1628_v37, %v1415_v36  ;;  %v1403_v41 = vld [vmem:[#allocation5] sm:$0xf] }
  0x3f   : > { %v1512_v42 = vor.u32 %v1652_v39, %v1511_v38  ;;  %v1625_v43 = vld [vmem:[#allocation5 + $0x8] sm:$0xf0]  ;;  %v1499_v44 = vld [vmem:[#allocation5 + $0xc0] sm:$0xf]  ;;  %v1609_v47 = vld [vmem:[%s2309_s28 + $0x4] sm:$0xf0] }
  0x40   : > { %698 = vmatpush.bf16.msra.mxu0 %v1464_v16  ;;  %1815 = vmatpush.bf16.msra.mxu2 %v1464_v16  ;;  %v1649_v45 = vld [vmem:[#allocation5 + $0xc8] sm:$0xf0]  ;;  %v1339_v46 = vld [vmem:[%s2309_s28] sm:$0xf]  ;;  %v1617_v49 = vld [vmem:[%s2309_s28 + $0x44] sm:$0xf0]  ;;  %v1404_v54 = vor.u32 %v1625_v43, %v1403_v41 }
  0x41   : > { %747 = vmatpush.bf16.msra.mxu1 %v1560_v17  ;;  %1823 = vmatpush.bf16.msra.mxu3 %v1560_v17  ;;  %v1371_v48 = vld [vmem:[%s2309_s28 + $0x40] sm:$0xf]  ;;  %v1645_v50 = vld [vmem:[#allocation5 + $0xac] sm:$0xf]  ;;  %v1489_v51 = vld [vmem:[#allocation5 + $0xb4] sm:$0xf0]  ;;  %v1500_v58 = vor.u32 %v1649_v45, %v1499_v44  ;;  %v2327_v3 = vor.u32 %v1609_v47, %v1339_v46 }
  0x42   : > { %v1669_v52 = vld [vmem:[#allocation5 + $0x16c] sm:$0xf]  ;;  %v1585_v53 = vld [vmem:[#allocation5 + $0x174] sm:$0xf0]  ;;  %v1608_v55 = vld [vmem:[%s2309_s28 + $0x4] sm:$0xf]  ;;  %v1492_v62 = vor.u32 %v1645_v50, %v1489_v51  ;;  %v2329_v4 = vor.u32 %v1617_v49, %v1371_v48 }
  0x43   : > { %v1341_v56 = vld [vmem:[%s2309_s28 + $0x8] sm:$0xf0]  ;;  %v1616_v57 = vld [vmem:[%s2309_s28 + $0x44] sm:$0xf]  ;;  %v1495_v60 = vld [vmem:[#allocation5 + $0xb0] sm:$0xf]  ;;  %v1588_v63 = vor.u32 %v1669_v52, %v1585_v53 }
  0x44   : > { %699 = vmatpush.bf16.msra.mxu0 %v1452_v22  ;;  %1816 = vmatpush.bf16.msra.mxu2 %v1452_v22  ;;  %v1373_v59 = vld [vmem:[%s2309_s28 + $0x48] sm:$0xf0]  ;;  %v1647_v61 = vld [vmem:[#allocation5 + $0xb8] sm:$0xf0]  ;;  %v1591_v0 = vld [vmem:[#allocation5 + $0x170] sm:$0xf]  ;;  %v2331_v8 = vor.u32 %v1608_v55, %v1341_v56 }
  0x45   : > { %748 = vmatpush.bf16.msra.mxu1 %v1548_v23  ;;  %1824 = vmatpush.bf16.msra.mxu3 %v1548_v23  ;;  %v1671_v1 = vld [vmem:[#allocation5 + $0x178] sm:$0xf0]  ;;  %v1642_v2 = vld [vmem:[#allocation5 + $0x94] sm:$0xf]  ;;  %v1477_v5 = vld [vmem:[#allocation5 + $0x9c] sm:$0xf0]  ;;  %v2333_v9 = vor.u32 %v1616_v57, %v1373_v59  ;;  %v1496_v10 = vor.u32 %v1647_v61, %v1495_v60 }
  0x46   : > { %v1666_v6 = vld [vmem:[#allocation5 + $0x154] sm:$0xf]  ;;  %v1573_v7 = vld [vmem:[#allocation5 + $0x15c] sm:$0xf0]  ;;  %v1592_v11 = vor.u32 %v1671_v1, %v1591_v0  ;;  %v1483_v12 = vld [vmem:[#allocation5 + $0x98] sm:$0xf]  ;;  %v1480_v14 = vor.u32 %v1642_v2, %v1477_v5 }
  0x47   : > { %v1644_v13 = vld [vmem:[#allocation5 + $0xa0] sm:$0xf0]  ;;  %v1576_v15 = vor.u32 %v1666_v6, %v1573_v7  ;;  %v1579_v16 = vld [vmem:[#allocation5 + $0x158] sm:$0xf]  ;;  %v1639_v18 = vld [vmem:[#allocation5 + $0x7c] sm:$0xf] }
  0x48   : > { %700 = vmatpush.bf16.msra.mxu0 %v1440_v28  ;;  %1817 = vmatpush.bf16.msra.mxu2 %v1440_v28  ;;  %v1668_v17 = vld [vmem:[#allocation5 + $0x160] sm:$0xf0]  ;;  %v1465_v19 = vld [vmem:[#allocation5 + $0x84] sm:$0xf0]  ;;  %v1663_v20 = vld [vmem:[#allocation5 + $0x13c] sm:$0xf]  ;;  %v1484_v22 = vor.u32 %v1644_v13, %v1483_v12 }
  0x49   : > { %749 = vmatpush.bf16.msra.mxu1 %v1536_v29  ;;  %1825 = vmatpush.bf16.msra.mxu3 %v1536_v29  ;;  %v1561_v21 = vld [vmem:[#allocation5 + $0x144] sm:$0xf0]  ;;  %v1580_v23 = vor.u32 %v1668_v17, %v1579_v16  ;;  %v1471_v24 = vld [vmem:[#allocation5 + $0x80] sm:$0xf]  ;;  %v1641_v25 = vld [vmem:[#allocation5 + $0x88] sm:$0xf0]  ;;  %v1468_v26 = vor.u32 %v1639_v18, %v1465_v19 }
  0x4a   : > { %v1564_v27 = vor.u32 %v1663_v20, %v1561_v21  ;;  %v1567_v28 = vld [vmem:[#allocation5 + $0x140] sm:$0xf]  ;;  %v1665_v29 = vld [vmem:[#allocation5 + $0x148] sm:$0xf0]  ;;  %v1636_v30 = vld [vmem:[#allocation5 + $0x64] sm:$0xf] }
  0x4b   : > { %v1453_v31 = vld [vmem:[#allocation5 + $0x6c] sm:$0xf0]  ;;  %v1660_v32 = vld [vmem:[#allocation5 + $0x124] sm:$0xf]  ;;  %v1459_v36 = vld [vmem:[#allocation5 + $0x68] sm:$0xf] }
  0x4c   : > { %701 = vmatpush.bf16.msra.mxu0 %v1428_v34  ;;  %1818 = vmatpush.bf16.msra.mxu2 %v1428_v34  ;;  %v1549_v33 = vld [vmem:[#allocation5 + $0x12c] sm:$0xf0]  ;;  %v1472_v34 = vor.u32 %v1641_v25, %v1471_v24  ;;  %v1638_v37 = vld [vmem:[#allocation5 + $0x70] sm:$0xf0]  ;;  %v1611_v39 = vld [vmem:[%s2309_s28 + $0x14] sm:$0xf0] }
  0x4d   : > { %750 = vmatpush.bf16.msra.mxu1 %v1524_v35  ;;  %1826 = vmatpush.bf16.msra.mxu3 %v1524_v35  ;;  %v1568_v35 = vor.u32 %v1665_v29, %v1567_v28  ;;  %v1347_v38 = vld [vmem:[%s2309_s28 + $0x10] sm:$0xf]  ;;  %v1619_v41 = vld [vmem:[%s2309_s28 + $0x54] sm:$0xf0]  ;;  %v1552_v43 = vor.u32 %v1660_v32, %v1549_v33  ;;  %v1555_v44 = vld [vmem:[#allocation5 + $0x128] sm:$0xf] }
  0x4e   : > { %v1662_v45 = vld [vmem:[#allocation5 + $0x130] sm:$0xf0]  ;;  %v1633_v46 = vld [vmem:[#allocation5 + $0x4c] sm:$0xf]  ;;  %v1441_v47 = vld [vmem:[#allocation5 + $0x54] sm:$0xf0] }
  0x4f   : > { %v1657_v48 = vld [vmem:[#allocation5 + $0x10c] sm:$0xf]  ;;  %v1537_v49 = vld [vmem:[#allocation5 + $0x114] sm:$0xf0]  ;;  %v1610_v50 = vld [vmem:[%s2309_s28 + $0x14] sm:$0xf]  ;;  %v1556_v55 = vor.u32 %v1662_v45, %v1555_v44 }
  0x50   : > { %702 = vmatpush.bf16.msra.mxu0 %v1416_v40  ;;  %1819 = vmatpush.bf16.msra.mxu2 %v1416_v40  ;;  %v1379_v40 = vld [vmem:[%s2309_s28 + $0x50] sm:$0xf]  ;;  %v1349_v51 = vld [vmem:[%s2309_s28 + $0x18] sm:$0xf0]  ;;  %v1618_v52 = vld [vmem:[%s2309_s28 + $0x54] sm:$0xf]  ;;  %v1540_v59 = vor.u32 %v1657_v48, %v1537_v49 }
  0x51   : > { %751 = vmatpush.bf16.msra.mxu1 %v1512_v42  ;;  %1827 = vmatpush.bf16.msra.mxu3 %v1512_v42  ;;  %v1456_v42 = vor.u32 %v1636_v30, %v1453_v31  ;;  %v1381_v53 = vld [vmem:[%s2309_s28 + $0x58] sm:$0xf0]  ;;  %v1447_v56 = vld [vmem:[#allocation5 + $0x50] sm:$0xf]  ;;  %v2349_v0 = vor.u32 %v1619_v41, %v1379_v40  ;;  %v1429_v1 = vld [vmem:[#allocation5 + $0x3c] sm:$0xf0]  ;;  %v2351_v6 = vor.u32 %v1610_v50, %v1349_v51 }
  0x52   : > { %v1635_v57 = vld [vmem:[#allocation5 + $0x58] sm:$0xf0]  ;;  %v1543_v60 = vld [vmem:[#allocation5 + $0x110] sm:$0xf]  ;;  %v1654_v2 = vld [vmem:[#allocation5 + $0xf4] sm:$0xf]  ;;  %v2353_v7 = vor.u32 %v1618_v52, %v1381_v53 }
  0x53   : > { %v1659_v61 = vld [vmem:[#allocation5 + $0x118] sm:$0xf0]  ;;  %v1525_v5 = vld [vmem:[#allocation5 + $0xfc] sm:$0xf0]  ;;  %v1435_v12 = vld [vmem:[#allocation5 + $0x38] sm:$0xf] }
  0x54   : > { %703 = vmatpush.bf16.msra.mxu0 %v1404_v54  ;;  %1820 = vmatpush.bf16.msra.mxu2 %v1404_v54  ;;  %v1460_v54 = vor.u32 %v1638_v37, %v1459_v36  ;;  %v1531_v16 = vld [vmem:[#allocation5 + $0xf8] sm:$0xf]  ;;  %v1656_v17 = vld [vmem:[#allocation5 + $0x100] sm:$0xf0]  ;;  %v1627_v18 = vld [vmem:[#allocation5 + $0x1c] sm:$0xf] }
  0x55   : > { %752 = vmatpush.bf16.msra.mxu1 %v1500_v58  ;;  %1828 = vmatpush.bf16.msra.mxu3 %v1500_v58  ;;  %v1444_v58 = vor.u32 %v1633_v46, %v1441_v47  ;;  %v1417_v19 = vld [vmem:[#allocation5 + $0x24] sm:$0xf0]  ;;  %v1651_v20 = vld [vmem:[#allocation5 + $0xdc] sm:$0xf]  ;;  %v1423_v24 = vld [vmem:[#allocation5 + $0x20] sm:$0xf] }
  0x56   : > { %v1629_v25 = vld [vmem:[#allocation5 + $0x28] sm:$0xf0]  ;;  %v1519_v28 = vld [vmem:[#allocation5 + $0xe0] sm:$0xf]  ;;  %v1624_v30 = vld [vmem:[#allocation5 + $0x4] sm:$0xf] }
  0x57   : > { %704 = vmatmul.bf16.vlgmr.msra.gmra.mxu0 %v2327_v3  ;;  %724 = vmatmul.bf16.vlgmr.msra.gmra.mxu2 %v2329_v4  ;;  %v1653_v29 = vld [vmem:[#allocation5 + $0xe8] sm:$0xf0]  ;;  %v1405_v31 = vld [vmem:[#allocation5 + $0xc] sm:$0xf0]  ;;  %v1648_v32 = vld [vmem:[#allocation5 + $0xc4] sm:$0xf] }
  0x58   : > { %794 = vmatpush.bf16.msrb.mxu2 %v1492_v62  ;;  %753 = vmatmul.bf16.vlgmr.msra.gmra.mxu1 %v2331_v8  ;;  %v1630_v62 = vld [vmem:[#allocation5 + $0x34] sm:$0xf]  ;;  %v1501_v33 = vld [vmem:[#allocation5 + $0xcc] sm:$0xf0]  ;;  %v1411_v36 = vld [vmem:[#allocation5 + $0x8] sm:$0xf]  ;;  %v1408_v37 = vor.u32 %v1624_v30, %v1405_v31 }
  0x59   : > { %843 = vmatpush.bf16.msrb.mxu3 %v1588_v63  ;;  %892 = vmatpush.bf16.msrb.mxu0 %v1496_v10  ;;  %v2347_v63 = vor.u32 %v1611_v39, %v1347_v38  ;;  %v1448_v10 = vor.u32 %v1635_v57, %v1447_v56  ;;  %v1432_v13 = vor.u32 %v1630_v62, %v1429_v1  ;;  %v1626_v39 = vld [vmem:[#allocation5 + $0x10] sm:$0xf0]  ;;  %v1507_v40 = vld [vmem:[#allocation5 + $0xc8] sm:$0xf]  ;;  %v1387_v44 = vld [vmem:[%s2309_s28 + $0x60] sm:$0xf] }
  0x5a   : > { %773 = vmatmul.bf16.vlgmr.msra.gmra.mxu3 %v2333_v9  ;;  %941 = vmatpush.bf16.msrb.mxu1 %v1592_v11  ;;  %v1544_v11 = vor.u32 %v1659_v61, %v1543_v60  ;;  %v1504_v38 = vor.u32 %v1648_v32, %v1501_v33  ;;  %v1650_v41 = vld [vmem:[#allocation5 + $0xd0] sm:$0xf0]  ;;  %v1621_v45 = vld [vmem:[%s2309_s28 + $0x64] sm:$0xf0]  ;;  %v1612_v46 = vld [vmem:[%s2309_s28 + $0x24] sm:$0xf]  ;;  %v1412_v50 = vor.u32 %v1626_v39, %v1411_v36 }
  0x5b   : > { %v1357_v47 = vld [vmem:[%s2309_s28 + $0x28] sm:$0xf0]  ;;  %v1620_v48 = vld [vmem:[%s2309_s28 + $0x64] sm:$0xf]  ;;  %v1508_v51 = vor.u32 %v1650_v41, %v1507_v40  ;;  %v2367_v53 = vor.u32 %v1621_v45, %v1387_v44  ;;  %v1363_v56 = vld [vmem:[%s2309_s28 + $0x30] sm:$0xf] }
  0x5c   : > { %795 = vmatpush.bf16.msrb.mxu2 %v1480_v14  ;;  %v1528_v14 = vor.u32 %v1654_v2, %v1525_v5  ;;  %v1389_v49 = vld [vmem:[%s2309_s28 + $0x68] sm:$0xf0]  ;;  %v1615_v57 = vld [vmem:[%s2309_s28 + $0x34] sm:$0xf0]  ;;  %v1614_v60 = vld [vmem:[%s2309_s28 + $0x34] sm:$0xf] }
  0x5d   : > { %844 = vmatpush.bf16.msrb.mxu3 %v1576_v15  ;;  %893 = vmatpush.bf16.msrb.mxu0 %v1484_v22  ;;  %v1632_v15 = vld [vmem:[#allocation5 + $0x40] sm:$0xf0]  ;;  %v1532_v22 = vor.u32 %v1656_v17, %v1531_v16  ;;  %v1365_v61 = vld [vmem:[%s2309_s28 + $0x38] sm:$0xf0]  ;;  %v1622_v62 = vld [vmem:[%s2309_s28 + $0x74] sm:$0xf]  ;;  %v1364_v2 = vor.u32 %v1615_v57, %v1363_v56 }
  0x5e   : > { %942 = vmatpush.bf16.msrb.mxu1 %v1580_v23  ;;  %v1436_v21 = vor.u32 %v1632_v15, %v1435_v12  ;;  %v1513_v23 = vld [vmem:[#allocation5 + $0xe4] sm:$0xf0]  ;;  %v1397_v1 = vld [vmem:[%s2309_s28 + $0x78] sm:$0xf0]  ;;  %s2400_s3 = sshll.u32 %s2305_s11, 6  ;;  %s1596_s15 = sshll.u32 %s2140_s18, 4 }
  0x5f   : > { %s2403_s4 = scalar_lea.vmem [#allocation7], %s2400_s3  ;;  %s1597_s20 = sshll.u32 %s2144_s19, 5 }
  0x60   : > { %796 = vmatpush.bf16.msrb.mxu2 %v1468_v26  ;;  %v1420_v26 = vor.u32 %v1627_v18, %v1417_v19  ;;  %s1108_s24 = sadd.s32 %s1597_s20, %s1596_s15  ;;  %s1111_s25 = sshll.u32 %s2403_s4, 4  ;;  %s2430_s25 = int_to_ptr.vmem [resolvable:$true] %s1111_s25 }
  0x61   : > { %845 = vmatpush.bf16.msrb.mxu3 %v1564_v27  ;;  %894 = vmatpush.bf16.msrb.mxu0 %v1472_v34  ;;  %v1516_v27 = vor.u32 %v1651_v20, %v1513_v23  ;;  %v1424_v34 = vor.u32 %v1629_v25, %v1423_v24  ;;  %s2428_s26 = sshll.u32 %s1108_s24, 2  ;;  %s1087_s6 = scalar_lea.sflag [#allocation4], %s2305_s11 }
  0x62   : > { %943 = vmatpush.bf16.msrb.mxu1 %v1568_v35  ;;  %v1520_v35 = vor.u32 %v1653_v29, %v1519_v28  ;;  %s1110_s19 = scalar_lea.hbm %s2559_s2, %s2428_s26  ;;  %s2014_s5 = scalar_lea.hbm %s2559_s2, 256 }
  0x63   : > { %s1113_s27 = sshll.u32 %s1110_s19, 4  ;;  %s1114_s27 = int_to_ptr.hbm [resolvable:$true] %s1113_s27 }
  0x64   : > { %797 = vmatpush.bf16.msrb.mxu2 %v1456_v42  ;;  %v1355_v42 = vld [vmem:[%s2309_s28 + $0x20] sm:$0xf]  ;;  %s2008_s7 = sshra.s32 %s1114_s27, 4  ;;  %s2009_s7 = int_to_ptr.hbm [resolvable:$true] %s2008_s7 }
  0x65   : > { %846 = vmatpush.bf16.msrb.mxu3 %v1552_v43  ;;  %895 = vmatpush.bf16.msrb.mxu0 %v1460_v54  ;;  %v1613_v43 = vld [vmem:[%s2309_s28 + $0x24] sm:$0xf0]  ;;  %v1360_v54 = vor.u32 %v1612_v46, %v1357_v47  ;;  %s2010_s8 = scalar_lea.hbm %s2009_s7, 64  ;;  %p2015_p10 = scmp.lt.s32.totalorder %s2009_s7, %s2559_s2 }
  0x66   : > { %944 = vmatpush.bf16.msrb.mxu1 %v1556_v55  ;;  %v1356_v52 = vor.u32 %v1613_v43, %v1355_v42  ;;  %v2369_v55 = vor.u32 %v1620_v48, %v1389_v49  ;;  %p2011_p1 = scmp.ne.s32.totalorder %s2009_s7, %s2010_s8  ;;  %p2016_p11 = scmp.lt.s32.totalorder %s2014_s5, %s2010_s8 }
  0x67   : > { %709 = vmatmul.bf16.gmra.mxu0 %v2347_v63  ;;  %729 = vmatmul.bf16.gmra.mxu2 %v2349_v0 }
  0x68   : > { %798 = vmatpush.bf16.msrb.mxu2 %v1444_v58  ;;  %758 = vmatmul.bf16.gmra.mxu1 %v2351_v6  ;;  %v1395_v58 = vld [vmem:[%s2309_s28 + $0x70] sm:$0xf]  ;;  %p2012_p4 = pnand %p2011_p1, %p2276_p3  ;;  %p2017_p12 = por %p2016_p11, %p2015_p10 }
  0x69   : > { %847 = vmatpush.bf16.msrb.mxu3 %v1540_v59  ;;  %896 = vmatpush.bf16.msrb.mxu0 %v1448_v10  ;;  %v1623_v59 = vld [vmem:[%s2309_s28 + $0x74] sm:$0xf0]  ;;  %v1368_v10 = vor.u32 %v1614_v60, %v1365_v61 }
  0x6a   : > { %778 = vmatmul.bf16.gmra.mxu3 %v2353_v7  ;;  %945 = vmatpush.bf16.msrb.mxu1 %v1544_v11  ;;  %v2381_v5 = vor.u32 %v1623_v59, %v1395_v58  ;;  %v2383_v11 = vor.u32 %v1622_v62, %v1397_v1  ;;  %p2013_p8 = pneg %p2012_p4 }
  0x6c   : > { %799 = vmatpush.bf16.msrb.mxu2 %v1432_v13  ;;  %p2018_p13 = pnand %p2017_p12, %p2013_p8 }
  0x6d   : > { %848 = vmatpush.bf16.msrb.mxu3 %v1528_v14  ;;  %897 = vmatpush.bf16.msrb.mxu0 %v1436_v21 }
  0x6e   : > { %946 = vmatpush.bf16.msrb.mxu1 %v1532_v22 }
  0x70   : > { %800 = vmatpush.bf16.msrb.mxu2 %v1420_v26 }
  0x71   : > { %849 = vmatpush.bf16.msrb.mxu3 %v1516_v27  ;;  %898 = vmatpush.bf16.msrb.mxu0 %v1424_v34 }
  0x72   : > { %947 = vmatpush.bf16.msrb.mxu1 %v1520_v35 }
  0x74   : > { %801 = vmatpush.bf16.msrb.mxu2 %v1408_v37 }
  0x75   : > { %850 = vmatpush.bf16.msrb.mxu3 %v1504_v38  ;;  %899 = vmatpush.bf16.msrb.mxu0 %v1412_v50 }
  0x76   : > { %948 = vmatpush.bf16.msrb.mxu1 %v1508_v51 }
  0x77   : > { %714 = vmatmul.bf16.gmra.mxu0 %v1356_v52  ;;  %734 = vmatmul.bf16.gmra.mxu2 %v2367_v53 }
  0x78   : > { %763 = vmatmul.bf16.gmra.mxu1 %v1360_v54 }
  0x7a   : > { %783 = vmatmul.bf16.gmra.mxu3 %v2369_v55 }
  0x87   : > { %719 = vmatmul.bf16.gmra.mxu0 %v1364_v2  ;;  %739 = vmatmul.bf16.gmra.mxu2 %v2381_v5 }
  0x88   : > { %768 = vmatmul.bf16.gmra.mxu1 %v1368_v10 }
  0x8a   : > { %788 = vmatmul.bf16.gmra.mxu3 %v2383_v11 }
  0x97   : > { %802 = vmatmul.bf16.vlgmr.msrb.gmra.mxu2 %v2327_v3  ;;  %900 = vmatmul.bf16.vlgmr.msrb.gmra.mxu0 %v2327_v3 }
  0x98   : > { %949 = vmatmul.bf16.vlgmr.msrb.gmra.mxu1 %v2331_v8 }
  0x9a   : > { %851 = vmatmul.bf16.vlgmr.msrb.gmra.mxu3 %v2331_v8 }
  0xa7   : > { %807 = vmatmul.bf16.gmra.mxu2 %v2347_v63  ;;  %905 = vmatmul.bf16.gmra.mxu0 %v2347_v63 }
  0xa8   : > { %954 = vmatmul.bf16.gmra.mxu1 %v2351_v6 }
  0xaa   : > { %856 = vmatmul.bf16.gmra.mxu3 %v2351_v6 }
  0xb7   : > { %812 = vmatmul.bf16.gmra.mxu2 %v1356_v52  ;;  %910 = vmatmul.bf16.gmra.mxu0 %v1356_v52 }
  0xb8   : > { %959 = vmatmul.bf16.gmra.mxu1 %v1360_v54 }
  0xba   : > { %861 = vmatmul.bf16.gmra.mxu3 %v1360_v54 }
  0xc7   : > { %817 = vmatmul.bf16.gmra.mxu2 %v1364_v2  ;;  %915 = vmatmul.bf16.gmra.mxu0 %v1364_v2 }
  0xc8   : > { %964 = vmatmul.bf16.gmra.mxu1 %v1368_v10 }
  0xca   : > { %866 = vmatmul.bf16.gmra.mxu3 %v1368_v10 }
  0xd4   : > { %v705_v3 = vpop.f32.mrf.mxu0 }
  0xd5   : > { %v754_v12 = vpop.f32.mrf.mxu1 }
  0xd6   : > { %v755_v6 = vadd.f32 %v754_v12, %v705_v3 }
  0xd7   : > { %822 = vmatmul.bf16.gmra.mxu2 %v2329_v4  ;;  %920 = vmatmul.bf16.gmra.mxu0 %v2329_v4 }
  0xd8   : > { %969 = vmatmul.bf16.gmra.mxu1 %v2333_v9 }
  0xda   : > { %871 = vmatmul.bf16.gmra.mxu3 %v2333_v9  ;;  %v725_v8 = vpop.f32.mrf.mxu2 }
  0xdc   : > { %v707_v13 = vpop.f32.mrf.mxu0 }
  0xdd   : > { %v774_v63 = vpop.f32.mrf.mxu3  ;;  %v756_v14 = vpop.f32.mrf.mxu1 }
  0xde   : > { %v757_v15 = vadd.f32 %v756_v14, %v707_v13  ;;  %v775_v18 = vadd.f32 %v774_v63, %v725_v8 }
  0xe0   : > { %v1675_v16 = vpack.c.bf16 %v757_v15, %v755_v6 }
  0xe2   : > { %1676 = vst [vmem:[%s2403_s4] sm:$0xff] %v1675_v16   ;;  %v727_v4 = vpop.f32.mrf.mxu2 }
  0xe4   : > { %v710_v9 = vpop.f32.mrf.mxu0 }
  0xe5   : > { %v776_v17 = vpop.f32.mrf.mxu3  ;;  %v759_v20 = vpop.f32.mrf.mxu1 }
  0xe6   : > { %v777_v19 = vadd.f32 %v776_v17, %v727_v4  ;;  %v760_v24 = vadd.f32 %v759_v20, %v710_v9 }
  0xe7   : > { %827 = vmatmul.bf16.gmra.mxu2 %v2349_v0  ;;  %925 = vmatmul.bf16.gmra.mxu0 %v2349_v0 }
  0xe8   : > { %v1695_v21 = vpack.c.bf16 %v777_v19, %v775_v18  ;;  %974 = vmatmul.bf16.gmra.mxu1 %v2353_v7 }
  0xea   : > { %1795 = vst [vmem:[%s2403_s4 + $0x20] sm:$0xff] %v1695_v21   ;;  %876 = vmatmul.bf16.gmra.mxu3 %v2353_v7  ;;  %v730_v22 = vpop.f32.mrf.mxu2 }
  0xec   : > { %v712_v25 = vpop.f32.mrf.mxu0 }
  0xed   : > { %v779_v23 = vpop.f32.mrf.mxu3  ;;  %v761_v26 = vpop.f32.mrf.mxu1 }
  0xee   : > { %v762_v27 = vadd.f32 %v761_v26, %v712_v25  ;;  %v780_v31 = vadd.f32 %v779_v23, %v730_v22 }
  0xf0   : > { %v1680_v28 = vpack.c.bf16 %v762_v27, %v760_v24 }
  0xf2   : > { %1792 = vst [vmem:[%s2403_s4 + $0x8] sm:$0xff] %v1680_v28   ;;  %v732_v29 = vpop.f32.mrf.mxu2 }
  0xf4   : > { %v715_v0 = vpop.f32.mrf.mxu0 }
  0xf5   : > { %v781_v30 = vpop.f32.mrf.mxu3  ;;  %v764_v33 = vpop.f32.mrf.mxu1 }
  0xf6   : > { %v782_v32 = vadd.f32 %v781_v30, %v732_v29  ;;  %v765_v36 = vadd.f32 %v764_v33, %v715_v0 }
  0xf7   : > { %832 = vmatmul.bf16.gmra.mxu2 %v2367_v53  ;;  %930 = vmatmul.bf16.gmra.mxu0 %v2367_v53 }
  0xf8   : > { %v1700_v34 = vpack.c.bf16 %v782_v32, %v780_v31  ;;  %979 = vmatmul.bf16.gmra.mxu1 %v2369_v55 }
  0xfa   : > { %1796 = vst [vmem:[%s2403_s4 + $0x28] sm:$0xff] %v1700_v34   ;;  %881 = vmatmul.bf16.gmra.mxu3 %v2369_v55  ;;  %v735_v7 = vpop.f32.mrf.mxu2 }
  0xfc   : > { %v717_v37 = vpop.f32.mrf.mxu0 }
  0xfd   : > { %v784_v35 = vpop.f32.mrf.mxu3  ;;  %v766_v38 = vpop.f32.mrf.mxu1 }
  0xfe   : > { %v767_v39 = vadd.f32 %v766_v38, %v717_v37  ;;  %v785_v43 = vadd.f32 %v784_v35, %v735_v7 }
 0x100   : > { %v1685_v40 = vpack.c.bf16 %v767_v39, %v765_v36 }
 0x102   : > { %1793 = vst [vmem:[%s2403_s4 + $0x10] sm:$0xff] %v1685_v40   ;;  %v737_v41 = vpop.f32.mrf.mxu2 }
 0x104   : > { %v720_v45 = vpop.f32.mrf.mxu0 }
 0x105   : > { %v786_v42 = vpop.f32.mrf.mxu3  ;;  %v769_v46 = vpop.f32.mrf.mxu1 }
 0x106   : > { %v787_v44 = vadd.f32 %v786_v42, %v737_v41  ;;  %v770_v50 = vadd.f32 %v769_v46, %v720_v45 }
 0x107   : > { %837 = vmatmul.bf16.gmra.mxu2 %v2381_v5  ;;  %935 = vmatmul.bf16.gmra.mxu0 %v2381_v5 }
 0x108   : > { %v1705_v47 = vpack.c.bf16 %v787_v44, %v785_v43  ;;  %984 = vmatmul.bf16.gmra.mxu1 %v2383_v11 }
 0x10a   : > { %1797 = vst [vmem:[%s2403_s4 + $0x30] sm:$0xff] %v1705_v47   ;;  %886 = vmatmul.bf16.gmra.mxu3 %v2383_v11  ;;  %v740_v48 = vpop.f32.mrf.mxu2 }
 0x10c   : > { %v722_v51 = vpop.f32.mrf.mxu0 }
 0x10d   : > { %v789_v49 = vpop.f32.mrf.mxu3  ;;  %v771_v52 = vpop.f32.mrf.mxu1 }
 0x10e   : > { %v772_v53 = vadd.f32 %v771_v52, %v722_v51  ;;  %v790_v57 = vadd.f32 %v789_v49, %v740_v48 }
 0x110   : > { %v1690_v54 = vpack.c.bf16 %v772_v53, %v770_v50 }
 0x112   : > { %1794 = vst [vmem:[%s2403_s4 + $0x18] sm:$0xff] %v1690_v54   ;;  %v742_v55 = vpop.f32.mrf.mxu2 }
 0x114   : > { %v901_v59 = vpop.f32.mrf.mxu0 }
 0x115   : > { %v791_v56 = vpop.f32.mrf.mxu3  ;;  %v950_v60 = vpop.f32.mrf.mxu1 }
 0x116   : > { %v792_v58 = vadd.f32 %v791_v56, %v742_v55  ;;  %v951_v2 = vadd.f32 %v950_v60, %v901_v59 }
 0x118   : > { %v1710_v61 = vpack.c.bf16 %v792_v58, %v790_v57 }
 0x11a   : > { %1798 = vst [vmem:[%s2403_s4 + $0x38] sm:$0xff] %v1710_v61   ;;  %v803_v62 = vpop.f32.mrf.mxu2 }
 0x11c   : > { %v903_v5 = vpop.f32.mrf.mxu0 }
 0x11d   : > { %v852_v1 = vpop.f32.mrf.mxu3  ;;  %v952_v10 = vpop.f32.mrf.mxu1 }
 0x11e   : > { %v953_v11 = vadd.f32 %v952_v10, %v903_v5 }
 0x11f   : > { %2021 = shalt.err (!%p2018_p13)
}
 0x120   : > { %s2163_s11 = smov 64   ;;  %s2164_s28 = smov 4   ;;  %v1755_v3 = vpack.c.bf16 %v953_v11, %v951_v2  ;;  %v853_v63 = vadd.f32 %v852_v1, %v803_v62 }
 0x121   : > { %1835 = dma.vmem_to_hbm [thread:$0]  (%p2276_p3), %s2430_s25, 1024, %s1114_s27, %s1087_s6, %s2163_s11, %s2163_s11, %s2164_s28  }
 0x122   : > { %s2452_s4 = scalar_lea.vmem [#allocation10], %s2400_s3  ;;  %v805_v12 = vpop.f32.mrf.mxu2  ;;  %s2456_s15 = scalar_lea.vmem [#allocation8], %s2400_s3 }
 0x123   : > { %1756 = vst [vmem:[%s2452_s4] sm:$0xff] %v1755_v3   ;;  %s2582_s24 = sld [smem:[#allocation20_spill]]  ;;  %s1130_s7 = sshll.u32 %s2456_s15, 4  ;;  %s1131_s7 = int_to_ptr.vmem [resolvable:$true] %s1130_s7 }
 0x124   : > { %v906_v13 = vpop.f32.mrf.mxu0  ;;  %s2583_s19 = sld [smem:[#allocation21_spill]]  ;;  %s1091_s8 = sand.u32 1, %s2231_s23  }
 0x125   : > { %v854_v8 = vpop.f32.mrf.mxu3  ;;  %v955_v14 = vpop.f32.mrf.mxu1  ;;  %s1149_s29 = sshll.u32 %s2452_s4, 4  ;;  %s2488_s29 = int_to_ptr.vmem [resolvable:$true] %s1149_s29 }
 0x126   : > { %v855_v6 = vadd.f32 %v854_v8, %v805_v12  ;;  %v956_v17 = vadd.f32 %v955_v14, %v906_v13 }
 0x128   : > { %v1715_v15 = vpack.c.bf16 %v855_v6, %v853_v63 }
 0x129   : > { %s1129_s25 = scalar_lea.hbm %s2582_s24, %s2428_s26  ;;  %s2042_s3 = scalar_lea.hbm %s2582_s24, 256 }
 0x12a   : > { %1716 = vst [vmem:[%s2456_s15] sm:$0xff] %v1715_v15   ;;  %v808_v16 = vpop.f32.mrf.mxu2  ;;  %s2584_s27 = smov %s2583_s19  ;;  %s1148_s6 = scalar_lea.hbm %s2583_s19, %s2428_s26 }
 0x12b   : > { %s2482_s12 = sshll.u32 %s1129_s25, 4  ;;  %s2485_s5 = sshll.u32 %s1148_s6, 4  ;;  %s1133_s12 = int_to_ptr.hbm [resolvable:$true] %s2482_s12  ;;  %s1152_s5 = int_to_ptr.hbm [resolvable:$true] %s2485_s5 }
 0x12c   : > { %v908_v18 = vpop.f32.mrf.mxu0  ;;  %s2492_s26 = scalar_lea.sflag [#allocation9], %s1091_s8  ;;  %s2036_s23 = sshra.s32 %s1133_s12, 4  ;;  %s2037_s23 = int_to_ptr.hbm [resolvable:$true] %s2036_s23 }
 0x12d   : > { %v857_v4 = vpop.f32.mrf.mxu3  ;;  %v957_v19 = vpop.f32.mrf.mxu1  ;;  %s2038_s9 = scalar_lea.hbm %s2037_s23, 64  ;;  %p2043_p9 = scmp.lt.s32.totalorder %s2037_s23, %s2582_s24 }
 0x12e   : > { %v958_v9 = vadd.f32 %v957_v19, %v908_v18  ;;  %v858_v23 = vadd.f32 %v857_v4, %v808_v16  ;;  %p2039_p0 = scmp.ne.s32.totalorder %s2037_s23, %s2038_s9  ;;  %p2044_p2 = scmp.lt.s32.totalorder %s2042_s3, %s2038_s9 }
 0x130   : > { %v1760_v20 = vpack.c.bf16 %v958_v9, %v956_v17  ;;  %p2040_p5 = pnand %p2039_p0, %p2276_p3  ;;  %p2045_p1 = por %p2044_p2, %p2043_p9 }
 0x132   : > { %1806 = vst [vmem:[%s2452_s4 + $0x8] sm:$0xff] %v1760_v20   ;;  %v810_v21 = vpop.f32.mrf.mxu2  ;;  %p2041_p7 = pneg %p2040_p5 }
 0x134   : > { %v911_v25 = vpop.f32.mrf.mxu0  ;;  %p2046_p4 = pnand %p2045_p1, %p2041_p7 }
 0x135   : > { %v859_v22 = vpop.f32.mrf.mxu3  ;;  %v960_v26 = vpop.f32.mrf.mxu1 }
 0x136   : > { %v860_v24 = vadd.f32 %v859_v22, %v810_v21  ;;  %v961_v30 = vadd.f32 %v960_v26, %v911_v25 }
 0x138   : > { %v1720_v27 = vpack.c.bf16 %v860_v24, %v858_v23 }
 0x13a   : > { %1799 = vst [vmem:[%s2456_s15 + $0x8] sm:$0xff] %v1720_v27   ;;  %v813_v28 = vpop.f32.mrf.mxu2 }
 0x13c   : > { %v913_v31 = vpop.f32.mrf.mxu0 }
 0x13d   : > { %v862_v29 = vpop.f32.mrf.mxu3  ;;  %v962_v32 = vpop.f32.mrf.mxu1 }
 0x13e   : > { %v963_v0 = vadd.f32 %v962_v32, %v913_v31  ;;  %v863_v35 = vadd.f32 %v862_v29, %v813_v28 }
 0x140   : > { %v1765_v33 = vpack.c.bf16 %v963_v0, %v961_v30 }
 0x142   : > { %1807 = vst [vmem:[%s2452_s4 + $0x10] sm:$0xff] %v1765_v33   ;;  %v815_v34 = vpop.f32.mrf.mxu2 }
 0x144   : > { %v916_v37 = vpop.f32.mrf.mxu0 }
 0x145   : > { %v864_v7 = vpop.f32.mrf.mxu3  ;;  %v965_v38 = vpop.f32.mrf.mxu1 }
 0x146   : > { %v865_v36 = vadd.f32 %v864_v7, %v815_v34  ;;  %v966_v42 = vadd.f32 %v965_v38, %v916_v37 }
 0x148   : > { %v1725_v39 = vpack.c.bf16 %v865_v36, %v863_v35 }
 0x14a   : > { %1800 = vst [vmem:[%s2456_s15 + $0x10] sm:$0xff] %v1725_v39   ;;  %v818_v40 = vpop.f32.mrf.mxu2 }
 0x14c   : > { %v918_v43 = vpop.f32.mrf.mxu0 }
 0x14d   : > { %v867_v41 = vpop.f32.mrf.mxu3  ;;  %v967_v44 = vpop.f32.mrf.mxu1 }
 0x14e   : > { %v968_v45 = vadd.f32 %v967_v44, %v918_v43  ;;  %v868_v49 = vadd.f32 %v867_v41, %v818_v40 }
 0x150   : > { %v1770_v46 = vpack.c.bf16 %v968_v45, %v966_v42 }
 0x152   : > { %1808 = vst [vmem:[%s2452_s4 + $0x18] sm:$0xff] %v1770_v46   ;;  %v820_v47 = vpop.f32.mrf.mxu2 }
 0x154   : > { %v921_v51 = vpop.f32.mrf.mxu0 }
 0x155   : > { %v869_v48 = vpop.f32.mrf.mxu3  ;;  %v970_v52 = vpop.f32.mrf.mxu1 }
 0x156   : > { %v870_v50 = vadd.f32 %v869_v48, %v820_v47  ;;  %v971_v56 = vadd.f32 %v970_v52, %v921_v51 }
 0x158   : > { %v1730_v53 = vpack.c.bf16 %v870_v50, %v868_v49 }
 0x15a   : > { %1801 = vst [vmem:[%s2456_s15 + $0x18] sm:$0xff] %v1730_v53   ;;  %v823_v54 = vpop.f32.mrf.mxu2 }
 0x15c   : > { %v923_v57 = vpop.f32.mrf.mxu0 }
 0x15d   : > { %v872_v55 = vpop.f32.mrf.mxu3  ;;  %v972_v58 = vpop.f32.mrf.mxu1 }
 0x15e   : > { %v973_v59 = vadd.f32 %v972_v58, %v923_v57  ;;  %v873_v1 = vadd.f32 %v872_v55, %v823_v54 }
 0x160   : > { %v1775_v60 = vpack.c.bf16 %v973_v59, %v971_v56 }
 0x162   : > { %1809 = vst [vmem:[%s2452_s4 + $0x20] sm:$0xff] %v1775_v60   ;;  %v825_v61 = vpop.f32.mrf.mxu2 }
 0x164   : > { %v926_v5 = vpop.f32.mrf.mxu0 }
 0x165   : > { %v874_v62 = vpop.f32.mrf.mxu3  ;;  %v975_v10 = vpop.f32.mrf.mxu1 }
 0x166   : > { %v875_v2 = vadd.f32 %v874_v62, %v825_v61  ;;  %v976_v8 = vadd.f32 %v975_v10, %v926_v5 }
 0x168   : > { %v1735_v11 = vpack.c.bf16 %v875_v2, %v873_v1 }
 0x16a   : > { %1802 = vst [vmem:[%s2456_s15 + $0x20] sm:$0xff] %v1735_v11   ;;  %v828_v3 = vpop.f32.mrf.mxu2 }
 0x16c   : > { %v928_v63 = vpop.f32.mrf.mxu0 }
 0x16d   : > { %v877_v12 = vpop.f32.mrf.mxu3  ;;  %v977_v6 = vpop.f32.mrf.mxu1 }
 0x16e   : > { %v978_v13 = vadd.f32 %v977_v6, %v928_v63  ;;  %v878_v4 = vadd.f32 %v877_v12, %v828_v3 }
 0x170   : > { %v1780_v14 = vpack.c.bf16 %v978_v13, %v976_v8 }
 0x172   : > { %1810 = vst [vmem:[%s2452_s4 + $0x28] sm:$0xff] %v1780_v14   ;;  %v830_v15 = vpop.f32.mrf.mxu2 }
 0x174   : > { %v931_v18 = vpop.f32.mrf.mxu0 }
 0x175   : > { %v879_v16 = vpop.f32.mrf.mxu3  ;;  %v980_v19 = vpop.f32.mrf.mxu1 }
 0x176   : > { %v880_v17 = vadd.f32 %v879_v16, %v830_v15  ;;  %v981_v22 = vadd.f32 %v980_v19, %v931_v18 }
 0x178   : > { %v1740_v9 = vpack.c.bf16 %v880_v17, %v878_v4 }
 0x17a   : > { %1803 = vst [vmem:[%s2456_s15 + $0x28] sm:$0xff] %v1740_v9   ;;  %v833_v20 = vpop.f32.mrf.mxu2 }
 0x17c   : > { %v933_v23 = vpop.f32.mrf.mxu0 }
 0x17d   : > { %v882_v21 = vpop.f32.mrf.mxu3  ;;  %v982_v24 = vpop.f32.mrf.mxu1 }
 0x17e   : > { %v983_v25 = vadd.f32 %v982_v24, %v933_v23  ;;  %v883_v29 = vadd.f32 %v882_v21, %v833_v20 }
 0x180   : > { %v1785_v26 = vpack.c.bf16 %v983_v25, %v981_v22 }
 0x182   : > { %1811 = vst [vmem:[%s2452_s4 + $0x30] sm:$0xff] %v1785_v26   ;;  %v835_v27 = vpop.f32.mrf.mxu2 }
 0x184   : > { %v936_v31 = vpop.f32.mrf.mxu0 }
 0x185   : > { %v884_v28 = vpop.f32.mrf.mxu3  ;;  %v985_v32 = vpop.f32.mrf.mxu1 }
 0x186   : > { %v885_v30 = vadd.f32 %v884_v28, %v835_v27  ;;  %v986_v7 = vadd.f32 %v985_v32, %v936_v31 }
 0x188   : > { %v1745_v0 = vpack.c.bf16 %v885_v30, %v883_v29 }
 0x18a   : > { %1804 = vst [vmem:[%s2456_s15 + $0x30] sm:$0xff] %v1745_v0   ;;  %v838_v33 = vpop.f32.mrf.mxu2 }
 0x18c   : > { %v938_v35 = vpop.f32.mrf.mxu0 }
 0x18d   : > { %v887_v34 = vpop.f32.mrf.mxu3  ;;  %v987_v36 = vpop.f32.mrf.mxu1 }
 0x18e   : > { %v988_v37 = vadd.f32 %v987_v36, %v938_v35  ;;  %v888_v41 = vadd.f32 %v887_v34, %v838_v33 }
 0x190   : > { %v1790_v38 = vpack.c.bf16 %v988_v37, %v986_v7 }
 0x192   : > { %1812 = vst [vmem:[%s2452_s4 + $0x38] sm:$0xff] %v1790_v38   ;;  %v840_v39 = vpop.f32.mrf.mxu2 }
 0x195   : > { %v889_v40 = vpop.f32.mrf.mxu3 }
 0x196   : > { %v890_v42 = vadd.f32 %v889_v40, %v840_v39 }
 0x198   : > { %v1750_v43 = vpack.c.bf16 %v890_v42, %v888_v41 }
 0x19a   : > { %1805 = vst [vmem:[%s2456_s15 + $0x38] sm:$0xff] %v1750_v43  }
 0x19b   : > { %2049 = shalt.err (!%p2046_p4)
}
 0x19c   : > { %1836 = dma.vmem_to_hbm [thread:$0]  (%p2276_p3), %s1131_s7, 1024, %s1133_s12, %s2492_s26, %s2163_s11, %s2163_s11, %s2164_s28  }
 0x19d   : > { %s2064_s15 = sshra.s32 %s1152_s5, 4  ;;  %s2070_s6 = scalar_lea.hbm %s2584_s27, 256  ;;  %s2065_s15 = int_to_ptr.hbm [resolvable:$true] %s2064_s15 }
 0x19e   : > { %s2066_s30 = scalar_lea.hbm %s2065_s15, 64  ;;  %p2071_p12 = scmp.lt.s32.totalorder %s2065_s15, %s2584_s27 }
 0x19f   : > { %p2067_p8 = scmp.ne.s32.totalorder %s2065_s15, %s2066_s30  ;;  %p2072_p13 = scmp.lt.s32.totalorder %s2070_s6, %s2066_s30 }
 0x1a1   : > { %p2068_p10 = pnand %p2067_p8, %p2276_p3  ;;  %p2073_p0 = por %p2072_p13, %p2071_p12 }
 0x1a3   : > { %p2069_p11 = pneg %p2068_p10 }
 0x1a5   : > { %p2074_p5 = pnand %p2073_p0, %p2069_p11 }
 0x1a7   : > { %2077 = shalt.err (!%p2074_p5)
}
 0x1a8   : > { %1837 = dma.vmem_to_hbm [thread:$0]  (%p2276_p3), %s2488_s29, 1024, %s1152_s5, %s2492_s26, %s2163_s11, %s2163_s11, %s2164_s28  }
 0x1a9 PF: > { %s2585_s7 = sld [smem:[#allocation15_spill]]  ;;  %p1862_p7 = scmp.ge.s32.totalorder %s2156_s22, 2 }
 0x1ab   : > { %p1850_p9 = pnand %p1862_p7, %p2247_p6 }
 0x1ad   : > { %p1851_p2 = pneg %p1850_p9 }
 0x1af   : > { %s1166_s9 = sand.u32 1, %s2585_s7  }
 0x1b0   : > { %s1167_s14 = scalar_lea.sflag [#allocation4], %s1166_s9 }
 0x1b1   : > { %2119 = dma.done.wait (%p1851_p2), %s1167_s14, 1024  }
 0x1b2   : > { %2121 = vsyncadd (%p1851_p2), %s1167_s14, 4294966272  ;;  %s2587_s13 = sadd.s32 4294967294, %s2156_s22  }
 0x1b3   : > { %s1176_s4 = sand.u32 1, %s2587_s13  }
 0x1b4   : > { %s1177_s3 = scalar_lea.sflag [#allocation9], %s1176_s4 }
 0x1b5   : > { %2123 = dma.done.wait (%p1851_p2), %s1177_s3, 2048  }
 0x1b6   : > { %2125 = vsyncadd (%p1851_p2), %s1177_s3, 4294965248  ;;  %s25_s22 = sadd.s32 1, %s2156_s22   ;;  %s2588_s18 = sld [smem:[#allocation16_spill]] }
 0x1b7   : > { %p22_p3 = scmp.ge.s32.totalorder %s25_s22, 6   ;;  %s2589_s20 = sld [smem:[#allocation18_spill]] }
 0x1b8   : > { %s2590_s15 = smov %s2132_s16  ;;  %s2591_s16 = smov %s2136_s17 }
 0x1b9   : > { %s2592_s17 = smov %s2293_s1  ;;  %s2593_s19 = smov %s2152_s21 }
 0x1ba   : > { %s2594_s21 = smov %s2600_s10  ;;  %24 = sbr.rel (!%p22_p3) target bundleno = 14 (0xe), region = 109 }
 0x1bf   :  { %1193 = vsyncpa [#allocation3], 1 }
 0x1c0   :  { %1195 = vsyncpa [#allocation3 + $0x1], 1 }
 0x1c1   :  { %1196 = vsyncpa [#allocation6], 1 }
 0x1c2   :  { %1197 = vsyncpa [#allocation4], 1 }
 0x1c3   :  { %1199 = vsyncpa [#allocation4 + $0x1], 1 }
 0x1c4   :  { %1200 = vsyncpa [#allocation9], 1 }
 0x1c5   :  { %1202 = vsyncpa [#allocation9 + $0x1], 1 }

</bundles_post_ra>
